<compile_context>
chip_gen: v7x
topology: tpu7x:2x2x1
jax: 0.10.0
libtpu: 0.0.40
codegen_flags: <defaults>
</compile_context>

<pallas_src>
import functools

import jax
import jax.numpy as jnp
from jax.experimental import pallas as pl
from jax.experimental.pallas import tpu as pltpu


def _vmem_budget_bytes():
    """Per-generation scoped-VMEM budget: ~half the physical VMEM
    (128 MiB on v5e/v6e -> 64 MiB budget, 64 MiB on v7x -> 32 MiB budget)."""
    try:
        cap = int(pltpu.get_tpu_info().vmem_capacity_bytes)
    except Exception:
        cap = 64 << 20  # conservative fallback (v7x-sized)
    return max(32 << 20, min(cap // 2, 96 << 20))


def _pick_tile(m128, b, ci, co, vmem_budget_bytes):
    """Pick (lane tile, grid steps) for the mode axis (m128 is a multiple of 128).

    * tile is a multiple of 128,
    * the double-buffered f32 real/imag blocks of x/w/out fit in ~half the
      VMEM budget (headroom for compiler scratch),
    * grid >= 2 whenever the mode axis has >= 256 lanes (pipeline overlap and
      work for both v7x TensorCores),
    * padding waste is bounded by < 128 lanes per grid step.
    """
    n128 = m128 // 128
    rows = b * ci + ci * co + b * co
    bytes_per_128 = 2 * 2 * rows * 4 * 128          # dbl-buf * re/im * f32 * lanes
    cap128 = max(1, (vmem_budget_bytes // 2) // bytes_per_128)
    min_steps = 2 if n128 >= 2 else 1
    grid = max(min_steps, pl.cdiv(n128, cap128))
    tile128 = pl.cdiv(n128, grid)
    return tile128 * 128, grid


def _spectral_mul_kernel(x_ref, w_ref, o_ref, *, B, Ci, Co):
    """Per-mode complex channel mixing, lane-dense over the mode axis.

    x_ref: (2, B*Ci, TM)   row = b*Ci + i   [axis 0 = real/imag]
    w_ref: (2, Ci*Co, TM)  row = i*Co + o
    o_ref: (2, B*Co, TM)   row = b*Co + o
    out[b, o, m] = sum_i x[b, i, m] * w[i, o, m]   (complex)
    """
    xr = x_ref[0]
    xi = x_ref[1]
    wr = w_ref[0]
    wi = w_ref[1]
    TM = xr.shape[-1]

    # Static unroll over tiny B/Ci; all intermediates are 2-D (sublane, lane).
    # TODO(synk): switch to lax.fori_loop(..., unroll=4) if Ci grows beyond ~8.
    for b in range(B):
        acc_r = jnp.zeros((Co, TM), jnp.float32)
        acc_i = jnp.zeros((Co, TM), jnp.float32)
        for i in range(Ci):
            xr_bi = xr[b * Ci + i:b * Ci + i + 1, :]    # (1, TM)
            xi_bi = xi[b * Ci + i:b * Ci + i + 1, :]
            wr_i = wr[i * Co:(i + 1) * Co, :]            # (Co, TM)
            wi_i = wi[i * Co:(i + 1) * Co, :]
            # Plain 4-mul / 2-add complex MAC (cheapest on a VPU without f32 FMA).
            acc_r = acc_r + xr_bi * wr_i - xi_bi * wi_i
            acc_i = acc_i + xr_bi * wi_i + xi_bi * wr_i
        o_ref[0, b * Co:(b + 1) * Co, :] = acc_r
        o_ref[1, b * Co:(b + 1) * Co, :] = acc_i


def spectral_mul_pallas(x_ri, w_ri, B, Ci, Co):
    """x_ri: (2, B*Ci, M) f32, w_ri: (2, Ci*Co, M) f32 -> (2, B*Co, M) f32."""
    M = x_ri.shape[-1]
    budget = _vmem_budget_bytes()
    m128 = ((M + 127) // 128) * 128
    tm, grid = _pick_tile(m128, B, Ci, Co, budget)
    m_pad = tm * grid
    if m_pad != M:
        pad = ((0, 0), (0, 0), (0, m_pad - M))
        x_ri = jnp.pad(x_ri, pad)
        w_ri = jnp.pad(w_ri, pad)

    kernel = functools.partial(_spectral_mul_kernel, B=B, Ci=Ci, Co=Co)
    out = pl.pallas_call(
        kernel,
        out_shape=jax.ShapeDtypeStruct((2, B * Co, m_pad), jnp.float32),
        grid_spec=pltpu.PrefetchScalarGridSpec(
            num_scalar_prefetch=0,
            grid=(grid,),
            in_specs=[
                pl.BlockSpec((2, B * Ci, tm), lambda i: (0, 0, i)),
                pl.BlockSpec((2, Ci * Co, tm), lambda i: (0, 0, i)),
            ],
            out_specs=pl.BlockSpec((2, B * Co, tm), lambda i: (0, 0, i))),
        compiler_params=pltpu.CompilerParams(
            # Each grid step writes a disjoint output lane tile -> "parallel" is valid.
            dimension_semantics=("parallel",),
            vmem_limit_bytes=budget),
    )(x_ri, w_ri)
    return out[..., :M]


def pack_spectral_weights(w1, w2):
    """One-time setup: (Ci, Co, m1, m2) complex weights -> (2, Ci*Co, 2*m1*m2) f32
    in the kernel's lane-dense layout (row = i*Co + o, axis 0 = real/imag)."""
    Ci, Co, m1, m2 = w1.shape
    MM = m1 * m2
    wp = jnp.concatenate([w1.reshape(Ci, Co, MM),
                          w2.reshape(Ci, Co, MM)], axis=-1)     # (Ci, Co, 2*MM) c64
    w_ri = jnp.stack([jnp.real(wp), jnp.imag(wp)], axis=0)      # (2, Ci, Co, 2*MM)
    return w_ri.reshape(2, Ci * Co, 2 * MM).astype(jnp.float32)


def spectral_conv2d_forward(x, w_ri, modes1, modes2):
    """x: (B, Ci, H, W) f32; w_ri: pre-packed weights from pack_spectral_weights."""
    B, Ci, H, W = x.shape
    Co = w_ri.shape[1] // Ci
    Wf = W // 2 + 1
    MM = modes1 * modes2

    # TODO(synk): rfft2/irfft2 have no Pallas TPU primitive; kept in plain JAX.
    x_ft = jnp.fft.rfft2(x)                                     # (B, Ci, H, Wf) c64

    # Reshape-only packing (modes already contiguous in the corner slices);
    # real/imag fused into one f32 array; (B, Ci) merged so the sublane axis
    # is a multiple of 8 for these channel counts.
    top = x_ft[:, :, :modes1, :modes2].reshape(B, Ci, MM)
    bot = x_ft[:, :, H - modes1:, :modes2].reshape(B, Ci, MM)
    xp = jnp.concatenate([top, bot], axis=-1)                   # (B, Ci, 2*MM) c64
    x_ri = jnp.stack([jnp.real(xp), jnp.imag(xp)], axis=0)      # (2, B, Ci, 2*MM)
    x_ri = x_ri.reshape(2, B * Ci, 2 * MM).astype(jnp.float32)

    o_ri = spectral_mul_pallas(x_ri, w_ri, B, Ci, Co)           # (2, B*Co, 2*MM)
    o_ri = o_ri.reshape(2, B, Co, 2 * MM)
    out_c = (o_ri[0] + 1j * o_ri[1]).astype(jnp.complex64)      # (B, Co, 2*MM)

    out_top = out_c[..., :MM].reshape(B, Co, modes1, modes2)
    out_bot = out_c[..., MM:].reshape(B, Co, modes1, modes2)

    out_ft = jnp.zeros((B, Co, H, Wf), dtype=jnp.complex64)
    out_ft = out_ft.at[:, :, :modes1, :modes2].set(out_top)
    out_ft = out_ft.at[:, :, H - modes1:, :modes2].set(out_bot)
    return jnp.fft.irfft2(out_ft, s=(H, W))                     # (B, Co, H, W) f32


def reference_forward(x, w1, w2, modes1, modes2):
    """Plain-JAX mirror of the PyTorch forward, for verification."""
    B, Ci, H, W = x.shape
    Co = w1.shape[1]
    x_ft = jnp.fft.rfft2(x)
    out_ft = jnp.zeros((B, Co, H, W // 2 + 1), dtype=jnp.complex64)
    out_ft = out_ft.at[:, :, :modes1, :modes2].set(
        jnp.einsum('bixy,ioxy->boxy', x_ft[:, :, :modes1, :modes2], w1))
    out_ft = out_ft.at[:, :, H - modes1:, :modes2].set(
        jnp.einsum('bixy,ioxy->boxy', x_ft[:, :, H - modes1:, :modes2], w2))
    return jnp.fft.irfft2(out_ft, s=(H, W))


if __name__ == "__main__":
    B, Cin, Cout = 2, 4, 4
    H = W = 16
    modes1 = modes2 = 4

    key = jax.random.PRNGKey(0)
    kx, k1r, k1i, k2r, k2i = jax.random.split(key, 5)

    x = jax.random.normal(kx, (B, Cin, H, W), dtype=jnp.float32)

    # Deterministic init mirroring scale * torch.rand(..., dtype=cfloat).
    scale = 1.0 / (Cin * Cout)
    w_shape = (Cin, Cout, modes1, modes2)
    w1 = (scale * (jax.random.uniform(k1r, w_shape)
                   + 1j * jax.random.uniform(k1i, w_shape))).astype(jnp.complex64)
    w2 = (scale * (jax.random.uniform(k2r, w_shape)
                   + 1j * jax.random.uniform(k2i, w_shape))).astype(jnp.complex64)

    # Weight packing hoisted out of the per-call path (done once at setup).
    w_ri = jax.block_until_ready(pack_spectral_weights(w1, w2))

    fwd = jax.jit(spectral_conv2d_forward, static_argnums=(2, 3))
    out = jax.block_until_ready(fwd(x, w_ri, modes1, modes2))

    ref = jax.block_until_ready(reference_forward(x, w1, w2, modes1, modes2))
    assert out.shape == (B, Cout, H, W)
    assert jnp.allclose(out, ref, atol=1e-4, rtol=1e-4), "mismatch vs reference"

    print("KERNEL_OK")
</pallas_src>

<mosaic_0001>
module attributes {stable_mosaic.version = 11 : i64} {
  func.func @_spectral_mul_kernel(%arg0: i32, %arg1: memref<2x8x128xf32, #tpu.memory_space<vmem>>, %arg2: memref<2x16x128xf32, #tpu.memory_space<vmem>>, %arg3: memref<2x8x128xf32, #tpu.memory_space<vmem>>) attributes {dimension_semantics = [#tpu.dimension_semantics<parallel>], iteration_bounds = array<i64: 1>, scalar_prefetch = 0 : i64, scratch_operands = 0 : i64, tpu.core_type = #tpu.core_type<tc>, window_params = [{transform_indices = @transform_0, window_bounds = array<i64: 2, 8, 128>}, {transform_indices = @transform_1, window_bounds = array<i64: 2, 16, 128>}, {transform_indices = @transform_2, window_bounds = array<i64: 2, 8, 128>}]} {
    %c0 = arith.constant 0 : index
    %c0_0 = arith.constant 0 : index
    %c0_1 = arith.constant 0 : index
    %0 = vector.load %arg1[%c0, %c0_0, %c0_1] : memref<2x8x128xf32, #tpu.memory_space<vmem>>, vector<1x8x128xf32>
    %1 = vector.shape_cast %0 : vector<1x8x128xf32> to vector<8x128xf32>
    %c1 = arith.constant 1 : index
    %c0_2 = arith.constant 0 : index
    %c0_3 = arith.constant 0 : index
    %2 = vector.load %arg1[%c1, %c0_2, %c0_3] : memref<2x8x128xf32, #tpu.memory_space<vmem>>, vector<1x8x128xf32>
    %3 = vector.shape_cast %2 : vector<1x8x128xf32> to vector<8x128xf32>
    %c0_4 = arith.constant 0 : index
    %c0_5 = arith.constant 0 : index
    %c0_6 = arith.constant 0 : index
    %4 = vector.load %arg2[%c0_4, %c0_5, %c0_6] : memref<2x16x128xf32, #tpu.memory_space<vmem>>, vector<1x16x128xf32>
    %5 = vector.shape_cast %4 : vector<1x16x128xf32> to vector<16x128xf32>
    %c1_7 = arith.constant 1 : index
    %c0_8 = arith.constant 0 : index
    %c0_9 = arith.constant 0 : index
    %6 = vector.load %arg2[%c1_7, %c0_8, %c0_9] : memref<2x16x128xf32, #tpu.memory_space<vmem>>, vector<1x16x128xf32>
    %7 = vector.shape_cast %6 : vector<1x16x128xf32> to vector<16x128xf32>
    %cst = arith.constant 0.000000e+00 : f32
    %8 = vector.broadcast %cst : f32 to vector<4x128xf32>
    %cst_10 = arith.constant 0.000000e+00 : f32
    %9 = vector.broadcast %cst_10 : f32 to vector<4x128xf32>
    %10 = vector.extract_strided_slice %1 {offsets = [0, 0], sizes = [1, 128], strides = [1, 1]} : vector<8x128xf32> to vector<1x128xf32>
    %11 = vector.extract_strided_slice %3 {offsets = [0, 0], sizes = [1, 128], strides = [1, 1]} : vector<8x128xf32> to vector<1x128xf32>
    %12 = vector.extract_strided_slice %5 {offsets = [0, 0], sizes = [4, 128], strides = [1, 1]} : vector<16x128xf32> to vector<4x128xf32>
    %13 = vector.extract_strided_slice %7 {offsets = [0, 0], sizes = [4, 128], strides = [1, 1]} : vector<16x128xf32> to vector<4x128xf32>
    %14 = vector.broadcast %10 : vector<1x128xf32> to vector<4x128xf32>
    %15 = arith.mulf %14, %12 : vector<4x128xf32>
    %16 = arith.addf %8, %15 : vector<4x128xf32>
    %17 = vector.broadcast %11 : vector<1x128xf32> to vector<4x128xf32>
    %18 = arith.mulf %17, %13 : vector<4x128xf32>
    %19 = arith.subf %16, %18 : vector<4x128xf32>
    %20 = vector.broadcast %10 : vector<1x128xf32> to vector<4x128xf32>
    %21 = arith.mulf %20, %13 : vector<4x128xf32>
    %22 = arith.addf %9, %21 : vector<4x128xf32>
    %23 = vector.broadcast %11 : vector<1x128xf32> to vector<4x128xf32>
    %24 = arith.mulf %23, %12 : vector<4x128xf32>
    %25 = arith.addf %22, %24 : vector<4x128xf32>
    %26 = vector.extract_strided_slice %1 {offsets = [1, 0], sizes = [1, 128], strides = [1, 1]} : vector<8x128xf32> to vector<1x128xf32>
    %27 = vector.extract_strided_slice %3 {offsets = [1, 0], sizes = [1, 128], strides = [1, 1]} : vector<8x128xf32> to vector<1x128xf32>
    %28 = vector.extract_strided_slice %5 {offsets = [4, 0], sizes = [4, 128], strides = [1, 1]} : vector<16x128xf32> to vector<4x128xf32>
    %29 = vector.extract_strided_slice %7 {offsets = [4, 0], sizes = [4, 128], strides = [1, 1]} : vector<16x128xf32> to vector<4x128xf32>
    %30 = vector.broadcast %26 : vector<1x128xf32> to vector<4x128xf32>
    %31 = arith.mulf %30, %28 : vector<4x128xf32>
    %32 = arith.addf %19, %31 : vector<4x128xf32>
    %33 = vector.broadcast %27 : vector<1x128xf32> to vector<4x128xf32>
    %34 = arith.mulf %33, %29 : vector<4x128xf32>
    %35 = arith.subf %32, %34 : vector<4x128xf32>
    %36 = vector.broadcast %26 : vector<1x128xf32> to vector<4x128xf32>
    %37 = arith.mulf %36, %29 : vector<4x128xf32>
    %38 = arith.addf %25, %37 : vector<4x128xf32>
    %39 = vector.broadcast %27 : vector<1x128xf32> to vector<4x128xf32>
    %40 = arith.mulf %39, %28 : vector<4x128xf32>
    %41 = arith.addf %38, %40 : vector<4x128xf32>
    %42 = vector.extract_strided_slice %1 {offsets = [2, 0], sizes = [1, 128], strides = [1, 1]} : vector<8x128xf32> to vector<1x128xf32>
    %43 = vector.extract_strided_slice %3 {offsets = [2, 0], sizes = [1, 128], strides = [1, 1]} : vector<8x128xf32> to vector<1x128xf32>
    %44 = vector.extract_strided_slice %5 {offsets = [8, 0], sizes = [4, 128], strides = [1, 1]} : vector<16x128xf32> to vector<4x128xf32>
    %45 = vector.extract_strided_slice %7 {offsets = [8, 0], sizes = [4, 128], strides = [1, 1]} : vector<16x128xf32> to vector<4x128xf32>
    %46 = vector.broadcast %42 : vector<1x128xf32> to vector<4x128xf32>
    %47 = arith.mulf %46, %44 : vector<4x128xf32>
    %48 = arith.addf %35, %47 : vector<4x128xf32>
    %49 = vector.broadcast %43 : vector<1x128xf32> to vector<4x128xf32>
    %50 = arith.mulf %49, %45 : vector<4x128xf32>
    %51 = arith.subf %48, %50 : vector<4x128xf32>
    %52 = vector.broadcast %42 : vector<1x128xf32> to vector<4x128xf32>
    %53 = arith.mulf %52, %45 : vector<4x128xf32>
    %54 = arith.addf %41, %53 : vector<4x128xf32>
    %55 = vector.broadcast %43 : vector<1x128xf32> to vector<4x128xf32>
    %56 = arith.mulf %55, %44 : vector<4x128xf32>
    %57 = arith.addf %54, %56 : vector<4x128xf32>
    %58 = vector.extract_strided_slice %1 {offsets = [3, 0], sizes = [1, 128], strides = [1, 1]} : vector<8x128xf32> to vector<1x128xf32>
    %59 = vector.extract_strided_slice %3 {offsets = [3, 0], sizes = [1, 128], strides = [1, 1]} : vector<8x128xf32> to vector<1x128xf32>
    %60 = vector.extract_strided_slice %5 {offsets = [12, 0], sizes = [4, 128], strides = [1, 1]} : vector<16x128xf32> to vector<4x128xf32>
    %61 = vector.extract_strided_slice %7 {offsets = [12, 0], sizes = [4, 128], strides = [1, 1]} : vector<16x128xf32> to vector<4x128xf32>
    %62 = vector.broadcast %58 : vector<1x128xf32> to vector<4x128xf32>
    %63 = arith.mulf %62, %60 : vector<4x128xf32>
    %64 = arith.addf %51, %63 : vector<4x128xf32>
    %65 = vector.broadcast %59 : vector<1x128xf32> to vector<4x128xf32>
    %66 = arith.mulf %65, %61 : vector<4x128xf32>
    %67 = arith.subf %64, %66 : vector<4x128xf32>
    %68 = vector.broadcast %58 : vector<1x128xf32> to vector<4x128xf32>
    %69 = arith.mulf %68, %61 : vector<4x128xf32>
    %70 = arith.addf %57, %69 : vector<4x128xf32>
    %71 = vector.broadcast %59 : vector<1x128xf32> to vector<4x128xf32>
    %72 = arith.mulf %71, %60 : vector<4x128xf32>
    %73 = arith.addf %70, %72 : vector<4x128xf32>
    %c0_11 = arith.constant 0 : index
    %c0_12 = arith.constant 0 : index
    %c0_13 = arith.constant 0 : index
    %74 = vector.load %arg3[%c0_11, %c0_12, %c0_13] : memref<2x8x128xf32, #tpu.memory_space<vmem>>, vector<1x4x128xf32>
    %75 = vector.shape_cast %74 : vector<1x4x128xf32> to vector<4x128xf32>
    %76 = vector.shape_cast %67 : vector<4x128xf32> to vector<1x4x128xf32>
    tpu.vector_store %arg3[%c0_11, %c0_12, %c0_13], %76 {strides = array<i32>} : memref<2x8x128xf32, #tpu.memory_space<vmem>>, vector<1x4x128xf32>,
    %c1_14 = arith.constant 1 : index
    %c0_15 = arith.constant 0 : index
    %c0_16 = arith.constant 0 : index
    %77 = vector.load %arg3[%c1_14, %c0_15, %c0_16] : memref<2x8x128xf32, #tpu.memory_space<vmem>>, vector<1x4x128xf32>
    %78 = vector.shape_cast %77 : vector<1x4x128xf32> to vector<4x128xf32>
    %79 = vector.shape_cast %73 : vector<4x128xf32> to vector<1x4x128xf32>
    tpu.vector_store %arg3[%c1_14, %c0_15, %c0_16], %79 {strides = array<i32>} : memref<2x8x128xf32, #tpu.memory_space<vmem>>, vector<1x4x128xf32>,
    %cst_17 = arith.constant 0.000000e+00 : f32
    %80 = vector.broadcast %cst_17 : f32 to vector<4x128xf32>
    %cst_18 = arith.constant 0.000000e+00 : f32
    %81 = vector.broadcast %cst_18 : f32 to vector<4x128xf32>
    %82 = vector.extract_strided_slice %1 {offsets = [4, 0], sizes = [1, 128], strides = [1, 1]} : vector<8x128xf32> to vector<1x128xf32>
    %83 = vector.extract_strided_slice %3 {offsets = [4, 0], sizes = [1, 128], strides = [1, 1]} : vector<8x128xf32> to vector<1x128xf32>
    %84 = vector.extract_strided_slice %5 {offsets = [0, 0], sizes = [4, 128], strides = [1, 1]} : vector<16x128xf32> to vector<4x128xf32>
    %85 = vector.extract_strided_slice %7 {offsets = [0, 0], sizes = [4, 128], strides = [1, 1]} : vector<16x128xf32> to vector<4x128xf32>
    %86 = vector.broadcast %82 : vector<1x128xf32> to vector<4x128xf32>
    %87 = arith.mulf %86, %84 : vector<4x128xf32>
    %88 = arith.addf %80, %87 : vector<4x128xf32>
    %89 = vector.broadcast %83 : vector<1x128xf32> to vector<4x128xf32>
    %90 = arith.mulf %89, %85 : vector<4x128xf32>
    %91 = arith.subf %88, %90 : vector<4x128xf32>
    %92 = vector.broadcast %82 : vector<1x128xf32> to vector<4x128xf32>
    %93 = arith.mulf %92, %85 : vector<4x128xf32>
    %94 = arith.addf %81, %93 : vector<4x128xf32>
    %95 = vector.broadcast %83 : vector<1x128xf32> to vector<4x128xf32>
    %96 = arith.mulf %95, %84 : vector<4x128xf32>
    %97 = arith.addf %94, %96 : vector<4x128xf32>
    %98 = vector.extract_strided_slice %1 {offsets = [5, 0], sizes = [1, 128], strides = [1, 1]} : vector<8x128xf32> to vector<1x128xf32>
    %99 = vector.extract_strided_slice %3 {offsets = [5, 0], sizes = [1, 128], strides = [1, 1]} : vector<8x128xf32> to vector<1x128xf32>
    %100 = vector.extract_strided_slice %5 {offsets = [4, 0], sizes = [4, 128], strides = [1, 1]} : vector<16x128xf32> to vector<4x128xf32>
    %101 = vector.extract_strided_slice %7 {offsets = [4, 0], sizes = [4, 128], strides = [1, 1]} : vector<16x128xf32> to vector<4x128xf32>
    %102 = vector.broadcast %98 : vector<1x128xf32> to vector<4x128xf32>
    %103 = arith.mulf %102, %100 : vector<4x128xf32>
    %104 = arith.addf %91, %103 : vector<4x128xf32>
    %105 = vector.broadcast %99 : vector<1x128xf32> to vector<4x128xf32>
    %106 = arith.mulf %105, %101 : vector<4x128xf32>
    %107 = arith.subf %104, %106 : vector<4x128xf32>
    %108 = vector.broadcast %98 : vector<1x128xf32> to vector<4x128xf32>
    %109 = arith.mulf %108, %101 : vector<4x128xf32>
    %110 = arith.addf %97, %109 : vector<4x128xf32>
    %111 = vector.broadcast %99 : vector<1x128xf32> to vector<4x128xf32>
    %112 = arith.mulf %111, %100 : vector<4x128xf32>
    %113 = arith.addf %110, %112 : vector<4x128xf32>
    %114 = vector.extract_strided_slice %1 {offsets = [6, 0], sizes = [1, 128], strides = [1, 1]} : vector<8x128xf32> to vector<1x128xf32>
    %115 = vector.extract_strided_slice %3 {offsets = [6, 0], sizes = [1, 128], strides = [1, 1]} : vector<8x128xf32> to vector<1x128xf32>
    %116 = vector.extract_strided_slice %5 {offsets = [8, 0], sizes = [4, 128], strides = [1, 1]} : vector<16x128xf32> to vector<4x128xf32>
    %117 = vector.extract_strided_slice %7 {offsets = [8, 0], sizes = [4, 128], strides = [1, 1]} : vector<16x128xf32> to vector<4x128xf32>
    %118 = vector.broadcast %114 : vector<1x128xf32> to vector<4x128xf32>
    %119 = arith.mulf %118, %116 : vector<4x128xf32>
    %120 = arith.addf %107, %119 : vector<4x128xf32>
    %121 = vector.broadcast %115 : vector<1x128xf32> to vector<4x128xf32>
    %122 = arith.mulf %121, %117 : vector<4x128xf32>
    %123 = arith.subf %120, %122 : vector<4x128xf32>
    %124 = vector.broadcast %114 : vector<1x128xf32> to vector<4x128xf32>
    %125 = arith.mulf %124, %117 : vector<4x128xf32>
    %126 = arith.addf %113, %125 : vector<4x128xf32>
    %127 = vector.broadcast %115 : vector<1x128xf32> to vector<4x128xf32>
    %128 = arith.mulf %127, %116 : vector<4x128xf32>
    %129 = arith.addf %126, %128 : vector<4x128xf32>
    %130 = vector.extract_strided_slice %1 {offsets = [7, 0], sizes = [1, 128], strides = [1, 1]} : vector<8x128xf32> to vector<1x128xf32>
    %131 = vector.extract_strided_slice %3 {offsets = [7, 0], sizes = [1, 128], strides = [1, 1]} : vector<8x128xf32> to vector<1x128xf32>
    %132 = vector.extract_strided_slice %5 {offsets = [12, 0], sizes = [4, 128], strides = [1, 1]} : vector<16x128xf32> to vector<4x128xf32>
    %133 = vector.extract_strided_slice %7 {offsets = [12, 0], sizes = [4, 128], strides = [1, 1]} : vector<16x128xf32> to vector<4x128xf32>
    %134 = vector.broadcast %130 : vector<1x128xf32> to vector<4x128xf32>
    %135 = arith.mulf %134, %132 : vector<4x128xf32>
    %136 = arith.addf %123, %135 : vector<4x128xf32>
    %137 = vector.broadcast %131 : vector<1x128xf32> to vector<4x128xf32>
    %138 = arith.mulf %137, %133 : vector<4x128xf32>
    %139 = arith.subf %136, %138 : vector<4x128xf32>
    %140 = vector.broadcast %130 : vector<1x128xf32> to vector<4x128xf32>
    %141 = arith.mulf %140, %133 : vector<4x128xf32>
    %142 = arith.addf %129, %141 : vector<4x128xf32>
    %143 = vector.broadcast %131 : vector<1x128xf32> to vector<4x128xf32>
    %144 = arith.mulf %143, %132 : vector<4x128xf32>
    %145 = arith.addf %142, %144 : vector<4x128xf32>
    %c0_19 = arith.constant 0 : index
    %c4 = arith.constant 4 : index
    %c0_20 = arith.constant 0 : index
    %146 = vector.load %arg3[%c0_19, %c4, %c0_20] : memref<2x8x128xf32, #tpu.memory_space<vmem>>, vector<1x4x128xf32>
    %147 = vector.shape_cast %146 : vector<1x4x128xf32> to vector<4x128xf32>
    %148 = vector.shape_cast %139 : vector<4x128xf32> to vector<1x4x128xf32>
    tpu.vector_store %arg3[%c0_19, %c4, %c0_20], %148 {strides = array<i32>} : memref<2x8x128xf32, #tpu.memory_space<vmem>>, vector<1x4x128xf32>,
    %c1_21 = arith.constant 1 : index
    %c4_22 = arith.constant 4 : index
    %c0_23 = arith.constant 0 : index
    %149 = vector.load %arg3[%c1_21, %c4_22, %c0_23] : memref<2x8x128xf32, #tpu.memory_space<vmem>>, vector<1x4x128xf32>
    %150 = vector.shape_cast %149 : vector<1x4x128xf32> to vector<4x128xf32>
    %151 = vector.shape_cast %145 : vector<4x128xf32> to vector<1x4x128xf32>
    tpu.vector_store %arg3[%c1_21, %c4_22, %c0_23], %151 {strides = array<i32>} : memref<2x8x128xf32, #tpu.memory_space<vmem>>, vector<1x4x128xf32>,
    return
  }
  func.func @transform_0(%arg0: i32) -> (i32, i32, i32) {
    %c0_i32 = arith.constant 0 : i32
    %c0_i32_0 = arith.constant 0 : i32
    %c0_i32_1 = arith.constant 0 : i32
    return %c0_i32, %c0_i32_0, %arg0 : i32, i32, i32
  }
  func.func @transform_1(%arg0: i32) -> (i32, i32, i32) {
    %c0_i32 = arith.constant 0 : i32
    %c0_i32_0 = arith.constant 0 : i32
    %c0_i32_1 = arith.constant 0 : i32
    return %c0_i32, %c0_i32_0, %arg0 : i32, i32, i32
  }
  func.func @transform_2(%arg0: i32) -> (i32, i32, i32) {
    %c0_i32 = arith.constant 0 : i32
    %c0_i32_0 = arith.constant 0 : i32
    %c0_i32_1 = arith.constant 0 : i32
    return %c0_i32, %c0_i32_0, %arg0 : i32, i32, i32
  }
}

</mosaic_0001>

<bundles_post_ra>
// kernel: spectral_conv2d_forward.1
= control target key start
LH: loop header
LB: loop body
LE: loop exit
PB: predicated region body
PF: predicated region fallthrough
CT: control target
= control target key end

     0   :  { %v19_v0 = vlaneseq  ;;  %s324_s0 = inlined_call_operand.vmem [shape: f32[2,8,128], index: 0, kind: input, shape index: {}]   ;;  %s325_s1 = inlined_call_operand.vmem [shape: f32[2,16,128], index: 1, kind: input, shape index: {}]   ;;  %s326_s2 = inlined_call_operand.vmem [shape: f32[2,8,128], index: 2, kind: output, shape index: {}]  }
   0x1   :  { %v229_v2 = vld [vmem:[%s324_s0] sm:$0xff]  ;;  %v234_v3 = vld [vmem:[%s324_s0 + $0x8] sm:$0xff]  ;;  %v248_v9 = vld [vmem:[%s325_s1 + $0x10] sm:$0xff] }
   0x2   :  { %v224_v1 = vshrl.u32 %v19_v0, 7  ;;  %v243_v8 = vld [vmem:[%s325_s1] sm:$0xff]  ;;  %v256_v13 = vld [vmem:[%s325_s1 + $0x8] sm:$0xff]  ;;  %v269_v22 = vld [vmem:[%s325_s1 + $0x18] sm:$0xff] }
   0x4   :  { %v21_v4 = vsub.s32 0, %v224_v1  ;;  %v37_v5 = vsub.s32 1, %v224_v1  ;;  %v65_v6 = vsub.s32 2, %v224_v1  ;;  %v81_v7 = vsub.s32 3, %v224_v1 }
   0x5   :  { %v112_v10 = vsub.s32 4, %v224_v1  ;;  %v128_v11 = vsub.s32 5, %v224_v1  ;;  %v156_v12 = vsub.s32 6, %v224_v1  ;;  %v172_v30 = vsub.s32 7, %v224_v1 }
   0x6   :  { %v22_v14 = vrot.slane %v229_v2, %v21_v4  ;;  %v28_v15 = vrot.slane %v234_v3, %v21_v4  ;;  %v38_v16 = vrot.slane %v229_v2, %v37_v5  ;;  %v47_v17 = vrot.slane %v234_v3, %v37_v5 }
   0x7   :  { %v66_v18 = vrot.slane %v229_v2, %v65_v6  ;;  %v72_v19 = vrot.slane %v234_v3, %v65_v6  ;;  %v82_v20 = vrot.slane %v229_v2, %v81_v7  ;;  %v91_v21 = vrot.slane %v234_v3, %v81_v7 }
   0x8   :  { %v23_v23 = vmul.f32 %v22_v14, %v243_v8  ;;  %v29_v24 = vmul.f32 %v248_v9, %v28_v15  ;;  %v39_v25 = vmul.f32 %v38_v16, %v243_v8  ;;  %v48_v26 = vmul.f32 %v248_v9, %v47_v17 }
   0x9   :  { %v67_v27 = vmul.f32 %v66_v18, %v256_v13  ;;  %v83_v28 = vmul.f32 %v82_v20, %v256_v13  ;;  %v92_v29 = vmul.f32 %v269_v22, %v91_v21  ;;  %v31_v34 = vmul.f32 %v248_v9, %v22_v14 }
   0xa   :  { %v30_v31 = vsub.f32 %v23_v23, %v29_v24  ;;  %v41_v32 = vrot.slane %v39_v25, 4  ;;  %v50_v33 = vrot.slane %v48_v26, 4  ;;  %v73_v35 = vmul.f32 %v269_v22, %v72_v19 }
   0xb   :  { %v85_v36 = vrot.slane %v83_v28, 4  ;;  %v33_v37 = vmul.f32 %v28_v15, %v243_v8  ;;  %v53_v38 = vmul.f32 %v248_v9, %v38_v16  ;;  %v94_v40 = vrot.slane %v92_v29, 4 }
   0xc   :  { %v43_v39 = vadd.f32 %v41_v32, %v30_v31  ;;  %v58_v41 = vmul.f32 %v47_v17, %v243_v8  ;;  %v75_v42 = vmul.f32 %v269_v22, %v66_v18  ;;  %v77_v45 = vmul.f32 %v72_v19, %v256_v13 }
   0xd   :  { %v34_v43 = vadd.f32 %v33_v37, %v31_v34  ;;  %v55_v44 = vrot.slane %v53_v38, 4  ;;  %v97_v46 = vmul.f32 %v269_v22, %v82_v20  ;;  %v113_v49 = vrot.slane %v229_v2, %v112_v10 }
   0xe   :  { %v52_v47 = vsub.f32 %v43_v39, %v50_v33  ;;  %v60_v48 = vrot.slane %v58_v41, 4  ;;  %v119_v50 = vrot.slane %v234_v3, %v112_v10  ;;  %v102_v53 = vmul.f32 %v91_v21, %v256_v13 }
   0xf   :  { %v57_v51 = vadd.f32 %v55_v44, %v34_v43  ;;  %v99_v52 = vrot.slane %v97_v46, 4  ;;  %v129_v54 = vrot.slane %v229_v2, %v128_v11  ;;  %v114_v56 = vmul.f32 %v113_v49, %v243_v8 }
  0x10   :  { %v68_v55 = vadd.f32 %v67_v27, %v52_v47  ;;  %v120_v57 = vmul.f32 %v248_v9, %v119_v50  ;;  %v138_v58 = vrot.slane %v234_v3, %v128_v11  ;;  %v157_v61 = vrot.slane %v229_v2, %v156_v12 }
  0x11   :  { %v62_v59 = vadd.f32 %v60_v48, %v57_v51  ;;  %v130_v60 = vmul.f32 %v129_v54, %v243_v8  ;;  %v163_v62 = vrot.slane %v234_v3, %v156_v12  ;;  %v173_v4 = vrot.slane %v229_v2, %v172_v30 }
  0x12   :  { %v74_v63 = vsub.f32 %v68_v55, %v73_v35  ;;  %v121_v0 = vsub.f32 %v114_v56, %v120_v57  ;;  %v139_v1 = vmul.f32 %v248_v9, %v138_v58  ;;  %v104_v6 = vrot.slane %v102_v53, 4 }
  0x13   :  { %v76_v5 = vadd.f32 %v75_v42, %v62_v59  ;;  %v132_v7 = vrot.slane %v130_v60, 4  ;;  %v158_v10 = vmul.f32 %v157_v61, %v256_v13  ;;  %v174_v15 = vmul.f32 %v173_v4, %v256_v13 }
  0x14   :  { %v87_v14 = vadd.f32 %v85_v36, %v74_v63  ;;  %v141_v11 = vrot.slane %v139_v1, 4  ;;  %v182_v16 = vrot.slane %v234_v3, %v172_v30  ;;  %v122_v12 = vmul.f32 %v248_v9, %v113_v49 }
  0x15   :  { %v78_v17 = vadd.f32 %v77_v45, %v76_v5  ;;  %v134_v18 = vadd.f32 %v132_v7, %v121_v0  ;;  %v124_v19 = vmul.f32 %v119_v50, %v243_v8  ;;  %v164_v2 = vmul.f32 %v269_v22, %v163_v62 }
  0x16   :  { %v96_v20 = vsub.f32 %v87_v14, %v94_v40  ;;  %v183_v21 = vmul.f32 %v269_v22, %v182_v16  ;;  %v144_v23 = vmul.f32 %v248_v9, %v129_v54  ;;  %v149_v27 = vmul.f32 %v138_v58, %v243_v8 }
  0x17   :  { %v101_v24 = vadd.f32 %v99_v52, %v78_v17  ;;  %v143_v25 = vsub.f32 %v134_v18, %v141_v11  ;;  %v125_v26 = vadd.f32 %v124_v19, %v122_v12  ;;  %v176_v30 = vrot.slane %v174_v15, 4 }
  0x18   :  { %107 = vst [vmem:[%s326_s2] sm:$0xf] %v96_v20  ;;  %v146_v3 = vrot.slane %v144_v23, 4  ;;  %v151_v31 = vrot.slane %v149_v27, 4  ;;  %v166_v33 = vmul.f32 %v269_v22, %v157_v61  ;;  %v188_v34 = vmul.f32 %v269_v22, %v173_v4 }
  0x19   :  { %v106_v28 = vadd.f32 %v104_v6, %v101_v24  ;;  %v159_v29 = vadd.f32 %v158_v10, %v143_v25  ;;  %v185_v8 = vrot.slane %v183_v21, 4  ;;  %v168_v36 = vmul.f32 %v163_v62, %v256_v13 }
  0x1a   :  { %v148_v32 = vadd.f32 %v146_v3, %v125_v26  ;;  %v193_v37 = vmul.f32 %v182_v16, %v256_v13  ;;  %v190_v40 = vrot.slane %v188_v34, 4 }
  0x1b   :  { %207 = vst [vmem:[%s326_s2 + $0x8] sm:$0xf] %v106_v28  ;;  %v165_v9 = vsub.f32 %v159_v29, %v164_v2 }
  0x1c   :  { %v153_v35 = vadd.f32 %v151_v31, %v148_v32  ;;  %v195_v43 = vrot.slane %v193_v37, 4 }
  0x1d   :  { %v178_v38 = vadd.f32 %v176_v30, %v165_v9 }
  0x1e   :  { %v167_v39 = vadd.f32 %v166_v33, %v153_v35 }
  0x1f   :  { %v187_v41 = vsub.f32 %v178_v38, %v185_v8 }
  0x20   :  { %v169_v42 = vadd.f32 %v168_v36, %v167_v39 }
  0x21   :  { %198 = vst [vmem:[%s326_s2 + $0x4] sm:$0xf] %v187_v41 }
  0x22   :  { %v192_v22 = vadd.f32 %v190_v40, %v169_v42 }
  0x24   :  { %v197_v44 = vadd.f32 %v195_v43, %v192_v22 }
  0x26   :  { %208 = vst [vmem:[%s326_s2 + $0xc] sm:$0xf] %v197_v44 }

// kernel: reverse.0
= control target key start
LH: loop header
LB: loop body
LE: loop exit
PB: predicated region body
PF: predicated region fallthrough
CT: control target
= control target key end

     0   :  { %v71_v3 = vlaneseq  ;;  %v64_v9 = vld [vmem:[#allocation0 + $0x7] ss:$-1 sm:$0xff]  ;;  %v78_v12 = vld [vmem:[#allocation0 + $0x17] ss:$-1 sm:$0xff]  ;;  %s329_s0 = inlined_call_operand.vmem [shape: f32[2,4,16,7], index: 0, kind: input, shape index: {}]   ;;  %s330_s1 = inlined_call_operand.vmem [shape: f32[2,4,16,7], index: 1, kind: output, shape index: {}]  }
   0x1   :  { %v44_v0 = vld [vmem:[%s329_s0] sm:$0xff]  ;;  %v46_v1 = vld [vmem:[%s329_s0 + $0x8] sm:$0xff]  ;;  %v48_v2 = vld [vmem:[%s329_s0 + $0x10] sm:$0xff]  ;;  %v65_v10 = vrot.slane %v64_v9, 1  ;;  %v79_v14 = vrot.slane %v78_v12, 1 }
   0x2   :  { %45 = vst [vmem:[#allocation0 + $0x8] sm:$0xff] %v44_v0  ;;  %47 = vst [vmem:[#allocation0 + $0x18] sm:$0xff] %v46_v1  ;;  %v50_v4 = vld [vmem:[%s329_s0 + $0x18] sm:$0xff]  ;;  %v52_v5 = vld [vmem:[%s329_s0 + $0x20] sm:$0xff]  ;;  %v72_v11 = vshrl.u32 %v71_v3, 7 }
   0x3   :  { %49 = vst [vmem:[#allocation0 + $0x28] sm:$0xff] %v48_v2  ;;  %v54_v6 = vld [vmem:[%s329_s0 + $0x28] sm:$0xff]  ;;  %51 = vst [vmem:[#allocation0 + $0x38] sm:$0xff] %v50_v4  ;;  %v56_v7 = vld [vmem:[%s329_s0 + $0x30] sm:$0xff] }
   0x4   :  { %53 = vst [vmem:[#allocation0 + $0x48] sm:$0xff] %v52_v5  ;;  %55 = vst [vmem:[#allocation0 + $0x58] sm:$0xff] %v54_v6  ;;  %v58_v8 = vld [vmem:[%s329_s0 + $0x38] sm:$0xff]  ;;  %v92_v13 = vld [vmem:[#allocation0 + $0x27] ss:$-1 sm:$0xff]  ;;  %vm73_vm0 = vcmp.lt.s32.totalorder %v72_v11, 7 }
   0x5   :  { %57 = vst [vmem:[#allocation0 + $0x68] sm:$0xff] %v56_v7  ;;  %59 = vst [vmem:[#allocation0 + $0x78] sm:$0xff] %v58_v8  ;;  %v93_v15 = vrot.slane %v92_v13, 1  ;;  %v106_v16 = vld [vmem:[#allocation0 + $0x37] ss:$-1 sm:$0xff] }
   0x6   :  { %66 = vst [vmem:[#allocation1] sm:$0xff] %v65_v10  ;;  %v107_v17 = vrot.slane %v106_v16, 1  ;;  %v120_v18 = vld [vmem:[#allocation0 + $0x47] ss:$-1 sm:$0xff]  ;;  %v134_v19 = vld [vmem:[#allocation0 + $0x57] ss:$-1 sm:$0xff] }
   0x7   :  { %80 = vst [vmem:[#allocation1 + $0x8] sm:$0xff] %v79_v14  ;;  %94 = vst [vmem:[#allocation1 + $0x10] sm:$0xff] %v93_v15  ;;  %v121_v20 = vrot.slane %v120_v18, 1  ;;  %v135_v21 = vrot.slane %v134_v19, 1  ;;  %v148_v22 = vld [vmem:[#allocation0 + $0x67] ss:$-1 sm:$0xff] }
   0x8   :  { %v162_v23 = vld [vmem:[#allocation0 + $0x77] ss:$-1 sm:$0xff]  ;;  %108 = vst [vmem:[#allocation1 + $0x18] sm:$0xff] %v107_v17  ;;  %v149_v24 = vrot.slane %v148_v22, 1 }
   0x9   :  { %v163_v25 = vrot.slane %v162_v23, 1  ;;  %v69_v26 = vld [vmem:[#allocation0 + $0xf] ss:$-1 sm:$0xff]  ;;  %v83_v27 = vld [vmem:[#allocation0 + $0x1f] ss:$-1 sm:$0xff]  ;;  %122 = vst [vmem:[#allocation1 + $0x20] sm:$0xff] %v121_v20 }
   0xa   :  { %v97_v28 = vld [vmem:[#allocation0 + $0x2f] ss:$-1 sm:$0xff]  ;;  %136 = vst [vmem:[#allocation1 + $0x28] sm:$0xff] %v135_v21  ;;  %v70_v29 = vrot.slane %v69_v26, 1  ;;  %v84_v30 = vrot.slane %v83_v27, 1  ;;  %150 = vst [vmem:[#allocation1 + $0x30] sm:$0xff] %v149_v24 }
   0xb   :  { %v98_v31 = vrot.slane %v97_v28, 1  ;;  %v111_v32 = vld [vmem:[#allocation0 + $0x3f] ss:$-1 sm:$0xff]  ;;  %164 = vst [vmem:[#allocation1 + $0x38] sm:$0xff] %v163_v25  ;;  %v125_v34 = vld [vmem:[#allocation0 + $0x4f] ss:$-1 sm:$0xff] }
   0xc   :  { %v112_v33 = vrot.slane %v111_v32, 1  ;;  %v139_v35 = vld [vmem:[#allocation0 + $0x5f] ss:$-1 sm:$0xff]  ;;  %74 = vst.msk [vmem:[#allocation1] sm:$0xff] %vm73_vm0, %v70_v29  ;;  %88 = vst.msk [vmem:[#allocation1 + $0x8] sm:$0xff] %vm73_vm0, %v84_v30  ;;  %v126_v36 = vrot.slane %v125_v34, 1 }
   0xd   :  { %102 = vst.msk [vmem:[#allocation1 + $0x10] sm:$0xff] %vm73_vm0, %v98_v31  ;;  %v140_v37 = vrot.slane %v139_v35, 1  ;;  %v153_v38 = vld [vmem:[#allocation0 + $0x6f] ss:$-1 sm:$0xff]  ;;  %v167_v39 = vld [vmem:[#allocation0 + $0x7f] ss:$-1 sm:$0xff] }
   0xe   :  { %116 = vst.msk [vmem:[#allocation1 + $0x18] sm:$0xff] %vm73_vm0, %v112_v33  ;;  %v154_v40 = vrot.slane %v153_v38, 1  ;;  %v168_v41 = vrot.slane %v167_v39, 1  ;;  %130 = vst.msk [vmem:[#allocation1 + $0x20] sm:$0xff] %vm73_vm0, %v126_v36 }
   0xf   :  { %144 = vst.msk [vmem:[#allocation1 + $0x28] sm:$0xff] %vm73_vm0, %v140_v37 }
  0x10   :  { %158 = vst.msk [vmem:[#allocation1 + $0x30] sm:$0xff] %vm73_vm0, %v154_v40  ;;  %172 = vst.msk [vmem:[#allocation1 + $0x38] sm:$0xff] %vm73_vm0, %v168_v41 }
  0x13   :  { %v214_v42 = vld [vmem:[#allocation1] sm:$0xff]  ;;  %v216_v43 = vld [vmem:[#allocation1 + $0x8] sm:$0xff] }
  0x14   :  { %v218_v44 = vld [vmem:[#allocation1 + $0x10] sm:$0xff]  ;;  %215 = vst [vmem:[%s330_s1] sm:$0xff] %v214_v42  ;;  %217 = vst [vmem:[%s330_s1 + $0x8] sm:$0xff] %v216_v43 }
  0x15   :  { %219 = vst [vmem:[%s330_s1 + $0x10] sm:$0xff] %v218_v44  ;;  %v220_v45 = vld [vmem:[#allocation1 + $0x18] sm:$0xff]  ;;  %v222_v46 = vld [vmem:[#allocation1 + $0x20] sm:$0xff] }
  0x16   :  { %221 = vst [vmem:[%s330_s1 + $0x18] sm:$0xff] %v220_v45  ;;  %v224_v47 = vld [vmem:[#allocation1 + $0x28] sm:$0xff]  ;;  %223 = vst [vmem:[%s330_s1 + $0x20] sm:$0xff] %v222_v46 }
  0x17   :  { %225 = vst [vmem:[%s330_s1 + $0x28] sm:$0xff] %v224_v47  ;;  %v226_v48 = vld [vmem:[#allocation1 + $0x30] sm:$0xff]  ;;  %v228_v49 = vld [vmem:[#allocation1 + $0x38] sm:$0xff] }
  0x18   :  { %227 = vst [vmem:[%s330_s1 + $0x30] sm:$0xff] %v226_v48  ;;  %229 = vst [vmem:[%s330_s1 + $0x38] sm:$0xff] %v228_v49 }

</bundles_post_ra>
